<compile_context>
chip_gen: v7x
topology: tpu7x:2x2x1
jax: 0.10.0
libtpu: 0.0.40
codegen_flags: <defaults>
</compile_context>

<pallas_src>
import functools

import jax
import jax.numpy as jnp
from jax import lax
from jax.experimental import pallas as pl
from jax.experimental.pallas import tpu as pltpu


def _round_up(v, m):
    return (v + m - 1) // m * m


# ---------------------------------------------------------------------------
# Fused kernel: segment-mean pooling (over node tiles) + MLP head.
# Grid: (num_node_tiles,)  -- reduction axis, accumulates into VMEM scratch.
# ---------------------------------------------------------------------------
def _fused_pool_mlp_kernel(batch_ref, x_ref, w1_ref, b1_ref, w2_ref, b2_ref,
                           out_ref, sums_ref, cnts_ref):
    t = pl.program_id(0)

    @pl.when(t == 0)
    def _init():
        sums_ref[...] = jnp.zeros_like(sums_ref)
        cnts_ref[...] = jnp.zeros_like(cnts_ref)

    seg = batch_ref[...]                                   # [1, TN] int32 (pad = -1)
    b_pad = sums_ref.shape[0]
    tn = seg.shape[1]

    # In-vreg transposed one-hot [B_pad, TN]; padding nodes (-1) match nothing.
    gid = lax.broadcasted_iota(jnp.int32, (b_pad, tn), 0)
    mask = gid == seg                                      # [B_pad, TN] bool
    onehot_t = mask.astype(x_ref.dtype)                    # bf16 for the MXU

    # Segment sum of this node tile: [B_pad, TN] @ [TN, emb] -> f32 accumulate.
    sums_ref[...] += jnp.dot(onehot_t, x_ref[...],
                             preferred_element_type=jnp.float32)
    cnts_ref[...] += jnp.sum(mask.astype(jnp.float32), axis=1, keepdims=True)

    @pl.when(t == pl.num_programs(0) - 1)
    def _finalize():
        inv = pl.reciprocal(jnp.maximum(cnts_ref[...], 1.0), approx=False)
        g = (sums_ref[...] * inv).astype(w1_ref.dtype)     # [B_pad, emb] bf16
        h = jnp.dot(g, w1_ref[...],
                    preferred_element_type=jnp.float32) + b1_ref[...]
        h = jnp.maximum(h, 0.0).astype(w2_ref.dtype)       # ReLU -> bf16
        p = jnp.dot(h, w2_ref[...],
                    preferred_element_type=jnp.float32) + b2_ref[...]
        out_ref[...] = p.astype(out_ref.dtype)             # [B_pad, task_pad]


def fused_pool_mlp_head(x, batch, num_graphs, w1, b1, w2, b2, *, node_tile=128):
    """Fused segment-mean pooling + Linear->ReLU->Linear head.

    x     : [N, emb] float32 node features
    batch : [N] int32 graph ids in [0, num_graphs)
    w1    : [emb, emb], b1: [1, emb]
    w2    : [emb, task], b2: [1, task]
    returns [num_graphs, task] float32
    """
    n, emb = x.shape
    task = w2.shape[1]

    n_pad = _round_up(max(n, node_tile), node_tile)        # node-tile multiple
    b_pad = _round_up(max(num_graphs, 8), 8)               # sublane multiple
    task_pad = _round_up(max(task, 128), 128)              # lane-dense output

    # Host-side casts / padding (bf16 matmul operands, f32 biases).
    x_p = jnp.zeros((n_pad, emb), jnp.bfloat16).at[:n].set(x.astype(jnp.bfloat16))
    batch_p = jnp.full((1, n_pad), -1, jnp.int32).at[0, :n].set(batch.astype(jnp.int32))
    w1_b = w1.astype(jnp.bfloat16)
    b1_f = b1.astype(jnp.float32)
    w2_p = jnp.zeros((emb, task_pad), jnp.bfloat16).at[:, :task].set(
        w2.astype(jnp.bfloat16))
    b2_p = jnp.zeros((1, task_pad), jnp.float32).at[:, :task].set(
        b2.astype(jnp.float32))

    grid = (n_pad // node_tile,)
    flops = 2 * n_pad * b_pad * emb + 2 * b_pad * emb * (emb + task_pad)
    bytes_accessed = (x_p.size * 2 + batch_p.size * 4 + w1_b.size * 2
                      + w2_p.size * 2 + b1_f.size * 4 + b2_p.size * 4
                      + b_pad * task_pad * 4)

    out = pl.pallas_call(
        _fused_pool_mlp_kernel,
        out_shape=jax.ShapeDtypeStruct((b_pad, task_pad), jnp.float32),
        grid_spec=pltpu.PrefetchScalarGridSpec(
            num_scalar_prefetch=0,
            grid=grid,
            in_specs=[
                pl.BlockSpec((1, node_tile), lambda t: (0, t)),     # batch ids
                pl.BlockSpec((node_tile, emb), lambda t: (t, 0)),   # x tile
                pl.BlockSpec((emb, emb), lambda t: (0, 0)),         # W1 resident
                pl.BlockSpec((1, emb), lambda t: (0, 0)),           # b1 resident
                pl.BlockSpec((emb, task_pad), lambda t: (0, 0)),    # W2 resident
                pl.BlockSpec((1, task_pad), lambda t: (0, 0)),      # b2 resident
            ],
            out_specs=pl.BlockSpec((b_pad, task_pad), lambda t: (0, 0)),
            scratch_shapes=[
                pltpu.VMEM((b_pad, emb), jnp.float32),   # per-graph sums
                pltpu.VMEM((b_pad, 1), jnp.float32),     # per-graph counts
            ],
        ),
        compiler_params=pltpu.CompilerParams(
            dimension_semantics=("arbitrary",),          # node axis is a reduction
            vmem_limit_bytes=32 * 1024 * 1024,           # fits v7x scoped default
        ),
        cost_estimate=pl.CostEstimate(
            flops=flops, transcendentals=0, bytes_accessed=bytes_accessed),
    )(batch_p, x_p, w1_b, b1_f, w2_p, b2_p)

    return out[:num_graphs, :task]


# ---------------------------------------------------------------------------
# Parameter initialization (mimics nn.Linear.reset_parameters)
# ---------------------------------------------------------------------------
def init_linear(key, fan_in, fan_out):
    kw, kb = jax.random.split(key)
    bound = 1.0 / jnp.sqrt(jnp.float32(fan_in))
    w = jax.random.uniform(kw, (fan_in, fan_out), jnp.float32, -bound, bound)
    b = jax.random.uniform(kb, (1, fan_out), jnp.float32, -bound, bound)
    return w, b


# ---------------------------------------------------------------------------
# Downstream forward
# ---------------------------------------------------------------------------
@functools.partial(jax.jit, static_argnames=("num_graphs",))
def downstream_forward(x, edge_index, edge_attr, batch, params, num_graphs):
    del edge_index, edge_attr  # unused by the mean-pool encoder stand-in
    w1, b1, w2, b2 = params
    return fused_pool_mlp_head(x, batch, num_graphs, w1, b1, w2, b2)


if __name__ == "__main__":
    emb_dim = 32
    task_num = 2
    num_nodes = 8
    num_graphs = 2

    key = jax.random.PRNGKey(0)
    kx, kl1, kl2 = jax.random.split(key, 3)

    # Node features, trivial edge info, and graph assignment vector.
    x = jax.random.normal(kx, (num_nodes, emb_dim), jnp.float32)
    edge_index = jnp.zeros((2, num_nodes), jnp.int32)
    edge_attr = jnp.zeros((num_nodes, 4), jnp.float32)
    batch = jnp.array([0, 0, 0, 0, 1, 1, 1, 1], jnp.int32)

    # graph_pred_linear (num_layer=2): Linear(emb,emb) -> ReLU -> Linear(emb,task)
    w1, b1 = init_linear(kl1, emb_dim, emb_dim)
    w2, b2 = init_linear(kl2, emb_dim, task_num)
    params = (w1, b1, w2, b2)

    pred = downstream_forward(x, edge_index, edge_attr, batch, params, num_graphs)
    jax.block_until_ready(pred)

    # Plain-JAX reference with matching bf16 matmul operands / f32 accumulation.
    def bf(a):
        return a.astype(jnp.bfloat16).astype(jnp.float32)

    one_hot = (batch[:, None] == jnp.arange(num_graphs)[None, :]).astype(jnp.float32)
    sums = one_hot.T @ bf(x)
    counts = jnp.maximum(one_hot.sum(axis=0)[:, None], 1.0)
    g_ref = sums / counts
    h_ref = jnp.maximum(bf(g_ref) @ bf(w1) + b1, 0.0)
    ref = bf(h_ref) @ bf(w2) + b2

    assert pred.shape == (num_graphs, task_num)
    assert jnp.allclose(pred, ref, atol=2e-2, rtol=2e-2), "mismatch vs reference"

    print("KERNEL_OK")
</pallas_src>

<mosaic_0001>
module attributes {stable_mosaic.version = 11 : i64} {
  func.func @_fused_pool_mlp_kernel(%arg0: i32, %arg1: memref<1x128xi32, #tpu.memory_space<vmem>>, %arg2: memref<128x32xbf16, #tpu.memory_space<vmem>>, %arg3: memref<32x32xbf16, #tpu.memory_space<vmem>>, %arg4: memref<1x32xf32, #tpu.memory_space<vmem>>, %arg5: memref<32x128xbf16, #tpu.memory_space<vmem>>, %arg6: memref<1x128xf32, #tpu.memory_space<vmem>>, %arg7: memref<8x128xf32, #tpu.memory_space<vmem>>, %arg8: memref<8x32xf32, #tpu.memory_space<vmem>>, %arg9: memref<8x1xf32, #tpu.memory_space<vmem>>) attributes {dimension_semantics = [#tpu.dimension_semantics<arbitrary>], iteration_bounds = array<i64: 1>, scalar_prefetch = 0 : i64, scratch_operands = 2 : i64, tpu.core_type = #tpu.core_type<tc>, window_params = [{transform_indices = @transform_0, window_bounds = array<i64: 1, 128>}, {transform_indices = @transform_1, window_bounds = array<i64: 128, 32>}, {pipeline_mode = #tpu.pipeline_mode<synchronous>, transform_indices = @transform_2, window_bounds = array<i64: 32, 32>}, {pipeline_mode = #tpu.pipeline_mode<synchronous>, transform_indices = @transform_3, window_bounds = array<i64: 1, 32>}, {pipeline_mode = #tpu.pipeline_mode<synchronous>, transform_indices = @transform_4, window_bounds = array<i64: 32, 128>}, {pipeline_mode = #tpu.pipeline_mode<synchronous>, transform_indices = @transform_5, window_bounds = array<i64: 1, 128>}, {pipeline_mode = #tpu.pipeline_mode<synchronous>, transform_indices = @transform_6, window_bounds = array<i64: 8, 128>}]} {
    %c0_i32 = arith.constant 0 : i32
    %0 = arith.cmpi eq, %arg0, %c0_i32 : i32
    %1 = arith.extui %0 : i1 to i32
    %c0_i32_0 = arith.constant 0 : i32
    %2 = arith.cmpi ne, %1, %c0_i32_0 : i32
    scf.if %2 {
      %cst_15 = arith.constant 0.000000e+00 : f32
      %25 = vector.broadcast %cst_15 : f32 to vector<8x32xf32>
      %c0_16 = arith.constant 0 : index
      %c0_17 = arith.constant 0 : index
      %26 = vector.load %arg8[%c0_16, %c0_17] : memref<8x32xf32, #tpu.memory_space<vmem>>, vector<8x32xf32>
      tpu.vector_store %arg8[%c0_16, %c0_17], %25 {strides = array<i32>} : memref<8x32xf32, #tpu.memory_space<vmem>>, vector<8x32xf32>,
      %cst_18 = arith.constant 0.000000e+00 : f32
      %27 = vector.broadcast %cst_18 : f32 to vector<8x1xf32>
      %c0_19 = arith.constant 0 : index
      %c0_20 = arith.constant 0 : index
      %28 = vector.load %arg9[%c0_19, %c0_20] : memref<8x1xf32, #tpu.memory_space<vmem>>, vector<8x1xf32>
      tpu.vector_store %arg9[%c0_19, %c0_20], %27 {strides = array<i32>} : memref<8x1xf32, #tpu.memory_space<vmem>>, vector<8x1xf32>,
    } else {
    }
    %c0 = arith.constant 0 : index
    %c0_1 = arith.constant 0 : index
    %3 = vector.load %arg1[%c0, %c0_1] : memref<1x128xi32, #tpu.memory_space<vmem>>, vector<1x128xi32>
    %4 = tpu.iota {dimensions = array<i32: 0>} : vector<8x128xi32>
    %5 = vector.broadcast %3 : vector<1x128xi32> to vector<8x128xi32>
    %6 = arith.cmpi eq, %4, %5 : vector<8x128xi32>
    %7 = arith.extui %6 : vector<8x128xi1> to vector<8x128xi32>
    %8 = arith.sitofp %7 : vector<8x128xi32> to vector<8x128xf32>
    %9 = arith.truncf %8 : vector<8x128xf32> to vector<8x128xbf16>
    %c0_2 = arith.constant 0 : index
    %c0_3 = arith.constant 0 : index
    %10 = vector.load %arg8[%c0_2, %c0_3] : memref<8x32xf32, #tpu.memory_space<vmem>>, vector<8x32xf32>
    %c0_4 = arith.constant 0 : index
    %c0_5 = arith.constant 0 : index
    %11 = vector.load %arg2[%c0_4, %c0_5] : memref<128x32xbf16, #tpu.memory_space<vmem>>, vector<128x32xbf16>
    %cst = arith.constant dense<0.000000e+00> : vector<8x32xf32>
    %12 = tpu.matmul %9, %11, %cst {dimension_numbers = #tpu.dot_dimension_numbers<[1], [0], [0], [1], [0, 0, 1, 1], [], []>} : vector<8x128xbf16>, vector<128x32xbf16>, vector<8x32xf32> -> vector<8x32xf32>
    %13 = arith.addf %10, %12 : vector<8x32xf32>
    %c0_6 = arith.constant 0 : index
    %c0_7 = arith.constant 0 : index
    %14 = vector.load %arg8[%c0_6, %c0_7] : memref<8x32xf32, #tpu.memory_space<vmem>>, vector<8x32xf32>
    tpu.vector_store %arg8[%c0_6, %c0_7], %13 {strides = array<i32>} : memref<8x32xf32, #tpu.memory_space<vmem>>, vector<8x32xf32>,
    %c0_8 = arith.constant 0 : index
    %c0_9 = arith.constant 0 : index
    %15 = vector.load %arg9[%c0_8, %c0_9] : memref<8x1xf32, #tpu.memory_space<vmem>>, vector<8x1xf32>
    %16 = arith.extui %6 : vector<8x128xi1> to vector<8x128xi32>
    %17 = arith.sitofp %16 : vector<8x128xi32> to vector<8x128xf32>
    %cst_10 = arith.constant dense<0.000000e+00> : vector<8xf32>
    %18 = vector.multi_reduction <add>, %17, %cst_10 [1] : vector<8x128xf32> to vector<8xf32>
    %19 = vector.shape_cast %18 : vector<8xf32> to vector<8x1xf32>
    %20 = arith.addf %15, %19 : vector<8x1xf32>
    %c0_11 = arith.constant 0 : index
    %c0_12 = arith.constant 0 : index
    %21 = vector.load %arg9[%c0_11, %c0_12] : memref<8x1xf32, #tpu.memory_space<vmem>>, vector<8x1xf32>
    tpu.vector_store %arg9[%c0_11, %c0_12], %20 {strides = array<i32>} : memref<8x1xf32, #tpu.memory_space<vmem>>, vector<8x1xf32>,
    %c0_i32_13 = arith.constant 0 : i32
    %22 = arith.cmpi eq, %arg0, %c0_i32_13 : i32
    %23 = arith.extui %22 : i1 to i32
    %c0_i32_14 = arith.constant 0 : i32
    %24 = arith.cmpi ne, %23, %c0_i32_14 : i32
    scf.if %24 {
      %c0_15 = arith.constant 0 : index
      %c0_16 = arith.constant 0 : index
      %25 = vector.load %arg9[%c0_15, %c0_16] : memref<8x1xf32, #tpu.memory_space<vmem>>, vector<8x1xf32>
      %cst_17 = arith.constant 1.000000e+00 : f32
      %26 = vector.broadcast %cst_17 : f32 to vector<8x1xf32>
      %27 = arith.maximumf %25, %26 : vector<8x1xf32>
      %28 = tpu.reciprocal %27 : vector<8x1xf32> -> vector<8x1xf32>
      %c0_18 = arith.constant 0 : index
      %c0_19 = arith.constant 0 : index
      %29 = vector.load %arg8[%c0_18, %c0_19] : memref<8x32xf32, #tpu.memory_space<vmem>>, vector<8x32xf32>
      %30 = vector.broadcast %28 : vector<8x1xf32> to vector<8x32xf32>
      %31 = arith.mulf %29, %30 : vector<8x32xf32>
      %32 = arith.truncf %31 : vector<8x32xf32> to vector<8x32xbf16>
      %c0_20 = arith.constant 0 : index
      %c0_21 = arith.constant 0 : index
      %33 = vector.load %arg3[%c0_20, %c0_21] : memref<32x32xbf16, #tpu.memory_space<vmem>>, vector<32x32xbf16>
      %cst_22 = arith.constant dense<0.000000e+00> : vector<8x32xf32>
      %34 = tpu.matmul %32, %33, %cst_22 {dimension_numbers = #tpu.dot_dimension_numbers<[1], [0], [0], [1], [0, 0, 1, 1], [], []>} : vector<8x32xbf16>, vector<32x32xbf16>, vector<8x32xf32> -> vector<8x32xf32>
      %c0_23 = arith.constant 0 : index
      %c0_24 = arith.constant 0 : index
      %35 = vector.load %arg4[%c0_23, %c0_24] : memref<1x32xf32, #tpu.memory_space<vmem>>, vector<1x32xf32>
      %36 = vector.broadcast %35 : vector<1x32xf32> to vector<8x32xf32>
      %37 = arith.addf %34, %36 : vector<8x32xf32>
      %cst_25 = arith.constant 0.000000e+00 : f32
      %38 = vector.broadcast %cst_25 : f32 to vector<8x32xf32>
      %39 = arith.maximumf %37, %38 : vector<8x32xf32>
      %40 = arith.truncf %39 : vector<8x32xf32> to vector<8x32xbf16>
      %c0_26 = arith.constant 0 : index
      %c0_27 = arith.constant 0 : index
      %41 = vector.load %arg5[%c0_26, %c0_27] : memref<32x128xbf16, #tpu.memory_space<vmem>>, vector<32x128xbf16>
      %cst_28 = arith.constant dense<0.000000e+00> : vector<8x128xf32>
      %42 = tpu.matmul %40, %41, %cst_28 {dimension_numbers = #tpu.dot_dimension_numbers<[1], [0], [0], [1], [0, 0, 1, 1], [], []>} : vector<8x32xbf16>, vector<32x128xbf16>, vector<8x128xf32> -> vector<8x128xf32>
      %c0_29 = arith.constant 0 : index
      %c0_30 = arith.constant 0 : index
      %43 = vector.load %arg6[%c0_29, %c0_30] : memref<1x128xf32, #tpu.memory_space<vmem>>, vector<1x128xf32>
      %44 = vector.broadcast %43 : vector<1x128xf32> to vector<8x128xf32>
      %45 = arith.addf %42, %44 : vector<8x128xf32>
      %c0_31 = arith.constant 0 : index
      %c0_32 = arith.constant 0 : index
      %46 = vector.load %arg7[%c0_31, %c0_32] : memref<8x128xf32, #tpu.memory_space<vmem>>, vector<8x128xf32>
      tpu.vector_store %arg7[%c0_31, %c0_32], %45 {strides = array<i32>} : memref<8x128xf32, #tpu.memory_space<vmem>>, vector<8x128xf32>,
    } else {
    }
    return
  }
  func.func @transform_0(%arg0: i32) -> (i32, i32) {
    %c0_i32 = arith.constant 0 : i32
    %c0_i32_0 = arith.constant 0 : i32
    return %c0_i32, %arg0 : i32, i32
  }
  func.func @transform_1(%arg0: i32) -> (i32, i32) {
    %c0_i32 = arith.constant 0 : i32
    %c0_i32_0 = arith.constant 0 : i32
    return %arg0, %c0_i32 : i32, i32
  }
  func.func @transform_2(%arg0: i32) -> (i32, i32) {
    %c0_i32 = arith.constant 0 : i32
    %c0_i32_0 = arith.constant 0 : i32
    %c0_i32_1 = arith.constant 0 : i32
    return %c0_i32, %c0_i32_0 : i32, i32
  }
  func.func @transform_3(%arg0: i32) -> (i32, i32) {
    %c0_i32 = arith.constant 0 : i32
    %c0_i32_0 = arith.constant 0 : i32
    %c0_i32_1 = arith.constant 0 : i32
    return %c0_i32, %c0_i32_0 : i32, i32
  }
  func.func @transform_4(%arg0: i32) -> (i32, i32) {
    %c0_i32 = arith.constant 0 : i32
    %c0_i32_0 = arith.constant 0 : i32
    %c0_i32_1 = arith.constant 0 : i32
    return %c0_i32, %c0_i32_0 : i32, i32
  }
  func.func @transform_5(%arg0: i32) -> (i32, i32) {
    %c0_i32 = arith.constant 0 : i32
    %c0_i32_0 = arith.constant 0 : i32
    %c0_i32_1 = arith.constant 0 : i32
    return %c0_i32, %c0_i32_0 : i32, i32
  }
  func.func @transform_6(%arg0: i32) -> (i32, i32) {
    %c0_i32 = arith.constant 0 : i32
    %c0_i32_0 = arith.constant 0 : i32
    %c0_i32_1 = arith.constant 0 : i32
    return %c0_i32, %c0_i32_0 : i32, i32
  }
}

</mosaic_0001>

<bundles_post_ra>
// kernel: downstream_forward.1
= control target key start
LH: loop header
LB: loop body
LE: loop exit
PB: predicated region body
PF: predicated region fallthrough
CT: control target
= control target key end

     0   :  { %v33_v0 = vlaneseq  ;;  %v400_v2 = vmov 0.0   ;;  %vm401_vm0 = vmmov 0   ;;  %vm30_vm1 = vcmask 7168   ;;  %s517_s0 = inlined_call_operand.vmem [shape: s32[1,128], index: 0, kind: input, shape index: {}]   ;;  %s518_s1 = inlined_call_operand.vmem [shape: bf16[128,32], index: 1, kind: input, shape index: {}]   ;;  %s519_s2 = inlined_call_operand.vmem [shape: bf16[32,32], index: 2, kind: input, shape index: {}]   ;;  %s520_s4 = inlined_call_operand.vmem [shape: bf16[32,128], index: 4, kind: input, shape index: {}]   ;;  %s521_s3 = inlined_call_operand.vmem [shape: f32[1,32], index: 3, kind: input, shape index: {}]   ;;  %s522_s5 = inlined_call_operand.vmem [shape: f32[1,128], index: 5, kind: input, shape index: {}]   ;;  %s523_s6 = inlined_call_operand.vmem [shape: f32[8,128], index: 6, kind: output, shape index: {}]  }
   0x1   :  { %v310_v1 = vld [vmem:[%s517_s0] ss:$0 sm:$0xff]  ;;  %345 = vmatprep.subr.bf16.mxu0 %v400_v2  ;;  %361 = vmatprep.mubr.msk.bf16.mxu0 %vm401_vm0, %v400_v2  ;;  %v387_v5 = vld [vmem:[%s518_s1 + $0x8] sm:$0xff]   ;;  %31 = vst.msk [vmem:[#allocation3] sm:$0xff] %vm30_vm1, %v400_v2  ;;  %v388_v7 = vld [vmem:[%s518_s1 + $0x10] sm:$0xff]   ;;  %v402_v11 = vmov 0  }
   0x2   :  { %v34_v3 = vshrl.u32 %v33_v0, 7  ;;  %v386_v4 = vld [vmem:[%s518_s1] sm:$0xff]   ;;  %365 = vmatprep.subr.bf16.mxu1 %v400_v2  ;;  %369 = vmatprep.mubr.msk.bf16.mxu1 %vm401_vm0, %v400_v2  ;;  %v389_v8 = vld [vmem:[%s518_s1 + $0x18] sm:$0xff]   ;;  %v391_v10 = vld [vmem:[%s518_s1 + $0x28] sm:$0xff]   ;;  %v403_v14 = vmov 1.0|1.0  }
   0x3   :  { %346 = vmatpush3.bf16.msra.mxu0 %v386_v4  ;;  %v390_v9 = vld [vmem:[%s518_s1 + $0x20] sm:$0xff]   ;;  %385 = vset.pattern.permute.xlu0 %v402_v11  ;;  %v392_v12 = vld [vmem:[%s518_s1 + $0x30] sm:$0xff]   ;;  %v393_v13 = vld [vmem:[%s518_s1 + $0x38] sm:$0xff]   ;;  %vm28_vm4 = vcmask 261120  }
   0x4   :  { %vm39_vm2 = vcmp.eq.s32.totalorder %v34_v3, %v310_v1  ;;  %347 = vmatprep.subr.bf16.mxu0 %v400_v2  ;;  %29 = vst.msk [vmem:[#allocation2] sm:$0xff] %vm28_vm4, %v400_v2  ;;  %v394_v15 = vld [vmem:[%s519_s2] sm:$0xff]   ;;  %v395_v22 = vld [vmem:[%s519_s2 + $0x8] sm:$0xff]  }
   0x5   :  { %v311_v6 = vsel %vm39_vm2, 1.0, %v400_v2  ;;  %vm320_vm3 = vmpackc.low %vm39_vm2, %vm39_vm2  ;;  %366 = vmatpush3.bf16.msra.mxu1 %v394_v15  ;;  %v396_v32 = vld [vmem:[%s520_s4] sm:$0xff]   ;;  %v397_v34 = vld [vmem:[%s520_s4 + $0x8] sm:$0xff]  }
   0x6   :  { %152 = vadd.xlane.f32.xlu0 %v311_v6  ;;  %367 = vmatprep.subr.bf16.mxu1 %v400_v2  ;;  %v322_v35 = vld [vmem:[%s521_s3] ss:$0 sm:$0xff] }
   0x7   :  { %348 = vmatpush3.bf16.msra.mxu0 %v387_v5  ;;  %v326_v43 = vld [vmem:[%s522_s5] ss:$0 sm:$0xff] }
   0x8   :  { %349 = vmatprep.subr.bf16.mxu0 %v400_v2  ;;  %v151_v16 = vld [vmem:[#allocation3] sm:$0xff] }
   0x9   :  { %368 = vmatpush3.bf16.msra.mxu1 %v395_v22 }
   0xa   :  { %373 = vmatprep.subr.bf16.mxu1 %v400_v2 }
   0xb   :  { %350 = vmatpush3.bf16.msra.mxu0 %v388_v7  ;;  %v43_v23 = vld [vmem:[#allocation2] sm:$0xff] }
   0xc   :  { %351 = vmatprep.subr.bf16.mxu0 %v400_v2 }
   0xf   :  { %352 = vmatpush3.bf16.msra.mxu0 %v389_v8 }
  0x10   :  { %353 = vmatprep.subr.bf16.mxu0 %v400_v2 }
  0x13   :  { %354 = vmatpush3.bf16.msra.mxu0 %v390_v9 }
  0x14   :  { %355 = vmatprep.subr.bf16.mxu0 %v400_v2 }
  0x17   :  { %356 = vmatpush3.bf16.msra.mxu0 %v391_v10 }
  0x18   :  { %357 = vmatprep.subr.bf16.mxu0 %v400_v2 }
  0x1b   :  { %358 = vmatpush3.bf16.msra.mxu0 %v392_v12 }
  0x1c   :  { %359 = vmatprep.subr.bf16.mxu0 %v400_v2 }
  0x1f   :  { %360 = vmatpush3.bf16.msra.mxu0 %v393_v13 }
  0x22   :  { %362 = vmatmul.mubr.msk.bf16.vlgmr.msra.gmra.mrb[0].mxu0 %vm320_vm3, %v403_v14 }
  0x93   :  { %v153_v17 = vpop.xlane.xlu0 %152 }
  0x94   :  { %v154_v18 = vadd.f32 %v153_v17, %v151_v16 }
  0x96   :  { %156 = vst.msk [vmem:[#allocation3] sm:$0xff] %vm30_vm1, %v154_v18 }
  0x9d   :  { %v160_v19 = vld [vmem:[#allocation3] sm:$0xff] }
  0x9e   :  { %v161_v20 = vmax.f32 %v160_v19, 1.0 }
  0xa0   :  { %398 = vrcp.f32 %v161_v20 }
  0xaa   :  { %v399_v21 = vpop.eup %398 }
  0xab   :  { %166 = vperm.xlu0 %385, %v399_v21  }
  0xf5   :  { %v142_v24 = vpop.f32.mrb[0].mxu0 }
  0xf6   :  { %v148_v25 = vadd.f32 %v142_v24, %v43_v23  ;;  %v363_v26 = vpop.f32.mrb[1].mxu0 }
  0xf7   :  { %v145_v27 = vpop.f32.mrb[2].mxu0 }
  0xf8   :  { %150 = vst.msk [vmem:[#allocation2] sm:$0xff] %vm28_vm4, %v148_v25  ;;  %v364_v28 = vpop.f32.mrb[3].mxu0 }
  0xff   :  { %v163_v29 = vld [vmem:[#allocation2] sm:$0xff] }
 0x12a   :  { %v167_v30 = vpop.permute.xlu0 %166 }
 0x12b   :  { %v169_v31 = vmul.f32 %v167_v30, %v163_v29 }
 0x12d   :  { %v170_v33 = vpack.c.bf16 %v169_v31, %v169_v31 }
 0x12f   :  { %370 = vmatmul.mubr.msk.bf16.vlgmr.msra.gmra.mrb[0].mxu1 %vm28_vm4, %v170_v33 }
 0x130   :  { %374 = vmatpush3.bf16.msra.mxu1 %v396_v32  ;;  %377 = vmatprep.mubr.msk.bf16.mxu1 %vm401_vm0, %v400_v2 }
 0x131   :  { %375 = vmatprep.subr.bf16.mxu1 %v400_v2 }
 0x134   :  { %376 = vmatpush3.bf16.msra.mxu1 %v397_v34 }
 0x202   :  { %v231_v36 = vpop.f32.mrb[0].mxu1 }
 0x203   :  { %v232_v37 = vadd.f32 %v322_v35, %v231_v36  ;;  %v371_v38 = vpop.f32.mrb[1].mxu1 }
 0x204   :  { %v234_v39 = vpop.f32.mrb[2].mxu1 }
 0x205   :  { %v237_v40 = vmax.f32 %v232_v37, 0.0  ;;  %v372_v41 = vpop.f32.mrb[3].mxu1 }
 0x207   :  { %v238_v42 = vpack.c.bf16 %v237_v40, %v237_v40 }
 0x209   :  { %378 = vmatmul.mubr.msk.bf16.vlgmr.msra.gmra.mrb[4].mxu1 %vm28_vm4, %v238_v42 }
 0x2dc   :  { %v299_v44 = vpop.f32.mrb[4].mxu1 }
 0x2dd   :  { %v300_v45 = vadd.f32 %v326_v43, %v299_v44  ;;  %v379_v46 = vpop.f32.mrb[5].mxu1 }
 0x2de   :  { %v302_v47 = vpop.f32.mrb[6].mxu1 }
 0x2df   :  { %305 = vst [vmem:[%s523_s6] sm:$0xff] %v300_v45  ;;  %v380_v48 = vpop.f32.mrb[7].mxu1 }

</bundles_post_ra>
